<compile_context>
chip_gen: v6e
topology: v6e:2x2x1
jax: 0.10.0
libtpu: 0.0.40
codegen_flags: <defaults>
</compile_context>

<pallas_src>
import functools

import jax
import jax.numpy as jnp
from jax.experimental import pallas as pl
from jax.experimental.pallas import tpu as pltpu

LN_EPS = 1e-5


def _round_up(x, m):
    return (x + m - 1) // m * m


def _sublane(dtype):
    # Packed-tile sublane granularity: 8 for 4-byte, 16 for 2-byte, 32 for 1-byte.
    return max(8, 32 // jnp.dtype(dtype).itemsize)


def _tpu_vmem_capacity():
    try:
        return int(pltpu.get_tpu_info().vmem_capacity_bytes)
    except Exception:
        return 64 * 1024 * 1024  # conservative (v7x per-core) fallback


_VMEM_CAP = _tpu_vmem_capacity()
# Leave headroom for compiler-internal scratch; cap at ~100 MiB on 128 MiB parts.
_VMEM_LIMIT = max(32 * 1024 * 1024,
                  min(_VMEM_CAP - 16 * 1024 * 1024, 100 * 1024 * 1024))


def _vmem_working_set(tm, tn, D, x_bytes, w_bytes, out_bytes):
    return (2 * tm * D * x_bytes          # x row tile (double-buffered)
            + 2 * D * tn * w_bytes        # W column stripe (double-buffered alloc)
            + 2 * tm * tn * out_bytes     # output tile (double-buffered)
            + tm * D * w_bytes            # LayerNorm scratch
            + (2 * D + tn) * 8)           # gamma/beta + bias (small)


def _pick_tn(D, tile_n, w_bytes, resident_limit):
    # Whole weight resident (single N stripe; constant block index means the
    # pipeline fetches it exactly once instead of once per row tile).
    if D * D * w_bytes <= resident_limit:
        return D
    if D % 128 == 0:
        tn = max(128, (min(tile_n, D) // 128) * 128)
        while D % tn != 0:
            tn -= 128
        return tn
    # D not lane-aligned: full-extent is the only legal block on this axis.
    # TODO(synk): a huge non-128-multiple D would need a padded W instead.
    return D


def prenorm_linear_kernel(x_ref, gb_ref, w_ref, b_ref, o_ref, y_ref):
    # x_ref : (TM, D)  input row tile
    # gb_ref: (2, D)   row 0 = gamma, row 1 = beta
    # w_ref : (D, TN)  weight column stripe (TN == D when W is resident)
    # b_ref : (1, TN)  bias stripe
    # o_ref : (TM, TN) output tile
    # y_ref : (TM, D)  VMEM scratch caching LayerNorm(x) in the matmul dtype

    # LayerNorm only on the first N step; later N steps reuse the cached tile.
    @pl.when(pl.program_id(1) == 0)
    def _layernorm():
        x = x_ref[...].astype(jnp.float32)
        mean = jnp.mean(x, axis=-1, keepdims=True)
        centered = x - mean
        var = jnp.mean(centered * centered, axis=-1, keepdims=True)
        inv_std = jax.lax.rsqrt(var + LN_EPS)
        gamma = gb_ref[0:1, :].astype(jnp.float32)
        beta = gb_ref[1:2, :].astype(jnp.float32)
        y_ref[...] = (centered * inv_std * gamma + beta).astype(y_ref.dtype)

    # fn = Linear: cached_y @ W[:, j-stripe] + b[j-stripe]; f32 accumulation.
    out = jnp.dot(y_ref[...], w_ref[...], preferred_element_type=jnp.float32)
    o_ref[...] = (out + b_ref[...].astype(jnp.float32)).astype(o_ref.dtype)


@functools.partial(
    jax.jit,
    static_argnames=("tile_m", "tile_n", "cast_weights_to_bf16",
                     "resident_w_bytes"))
def prenorm_linear(x, gamma, beta, w, b, *, tile_m=None, tile_n=512,
                   cast_weights_to_bf16=True, resident_w_bytes=None):
    """x: (B, S, D). Returns fn(LayerNorm(x)) with fn = Linear(D, D)."""
    B, S, D = x.shape
    rows = B * S

    # bf16 operands hit the fast MXU path (f32 matmul is multi-pass emulation);
    # accumulation stays f32 inside the kernel, LayerNorm math stays f32.
    if cast_weights_to_bf16 and w.dtype == jnp.float32:
        w = w.astype(jnp.bfloat16)

    x_bytes = jnp.dtype(x.dtype).itemsize
    w_bytes = jnp.dtype(w.dtype).itemsize
    out_bytes = x_bytes
    budget = int(_VMEM_LIMIT * 0.8)

    # Row tile: large (amortizes ~0.35us per-grid-step overhead, feeds the MXU),
    # at the dtype-correct sublane granularity, capped for tiny inputs.
    sub = _sublane(x.dtype)
    if tile_m is None:
        tile_m = 512 if _VMEM_CAP >= 96 * 1024 * 1024 else 256
    tm = min(_round_up(tile_m, sub), _round_up(rows, sub))

    # N tile of W: full D (resident W) when it fits, else lane-dense stripes.
    resident_limit = (budget // 3) if resident_w_bytes is None else resident_w_bytes
    tn = _pick_tn(D, tile_n, w_bytes, resident_limit)

    # Shrink tiles until the double-buffered working set fits VMEM (matters on
    # v7x's 64 MiB part with large D): stripe W first, then shrink rows.
    while (_vmem_working_set(tm, tn, D, x_bytes, w_bytes, out_bytes) > budget
           and tn % 256 == 0):
        tn //= 2
    while (_vmem_working_set(tm, tn, D, x_bytes, w_bytes, out_bytes) > budget
           and tm > 2 * sub):
        tm = max(sub, _round_up(tm // 2, sub))

    x2 = x.reshape(rows, D)                 # no jnp.pad: ragged last row block
    gb = jnp.stack([gamma, beta], axis=0)   # is handled by cdiv grid + masked
    b2 = b.reshape(1, D)                    # output stores

    # N axis last: the x row tile and the cached LayerNorm scratch are reused
    # across every N stripe of W before moving to the next row tile.
    grid = (pl.cdiv(rows, tm), D // tn)

    out2 = pl.pallas_call(
        prenorm_linear_kernel,
        out_shape=jax.ShapeDtypeStruct((rows, D), x.dtype),
        grid_spec=pltpu.PrefetchScalarGridSpec(
            num_scalar_prefetch=0,
            grid=grid,
            in_specs=[
                pl.BlockSpec((tm, D), lambda i, j: (i, 0)),   # x row tile
                pl.BlockSpec((2, D), lambda i, j: (0, 0)),    # gamma/beta
                pl.BlockSpec((D, tn), lambda i, j: (0, j)),   # W column stripe
                pl.BlockSpec((1, tn), lambda i, j: (0, j)),   # bias stripe
            ],
            out_specs=pl.BlockSpec((tm, tn), lambda i, j: (i, j)),
            scratch_shapes=[pltpu.VMEM((tm, D), w.dtype)],    # cached LayerNorm
        ),
        compiler_params=pltpu.CompilerParams(
            # N axis carries the LN-cache dependence (j == 0 guard) -> arbitrary.
            dimension_semantics=("parallel", "arbitrary"),
            vmem_limit_bytes=_VMEM_LIMIT,
        ),
    )(x2, gb, w, b2)

    return out2.reshape(B, S, D)


def reference(x, gamma, beta, w, b):
    xf = x.astype(jnp.float32)
    mean = jnp.mean(xf, axis=-1, keepdims=True)
    var = jnp.mean((xf - mean) ** 2, axis=-1, keepdims=True)
    xn = (xf - mean) * jax.lax.rsqrt(var + LN_EPS)
    y = xn * gamma.astype(jnp.float32) + beta.astype(jnp.float32)
    out = y @ w.astype(jnp.float32) + b.astype(jnp.float32)
    return out.astype(x.dtype)


def _run_case(key, B, S, D, *, cast_bf16, atol, rtol, **kw):
    k_x, k_w, k_b = jax.random.split(key, 3)
    x = jax.random.normal(k_x, (B, S, D), dtype=jnp.float32)

    # LayerNorm params (torch init: weight=1, bias=0) — perturbed slightly but
    # deterministically so the affine path is exercised.
    gamma = jnp.ones((D,), jnp.float32) + 0.01 * jnp.arange(D, dtype=jnp.float32)
    beta = 0.001 * jnp.arange(D, dtype=jnp.float32)

    # fn = Linear(D, D) params, deterministic.
    w = jax.random.normal(k_w, (D, D), dtype=jnp.float32) * 0.05
    b = jax.random.normal(k_b, (D,), dtype=jnp.float32) * 0.05

    out = prenorm_linear(x, gamma, beta, w, b,
                         cast_weights_to_bf16=cast_bf16, **kw)
    out = jax.block_until_ready(out)

    ref = reference(x, gamma, beta, w, b)
    assert out.shape == (B, S, D)
    assert bool(jnp.all(jnp.isfinite(out)))
    assert jnp.allclose(out, ref, atol=atol, rtol=rtol), \
        f"mismatch vs reference at (B,S,D)=({B},{S},{D}), bf16={cast_bf16}"


if __name__ == "__main__":
    key = jax.random.PRNGKey(0)
    k0, k1, k2 = jax.random.split(key, 3)

    # f32-weight path (exact module semantics), small D < 128, resident W.
    _run_case(k0, B=2, S=8, D=32, cast_bf16=False, atol=1e-4, rtol=1e-4)

    # bf16 fast path, lane-dense D, ragged row count (18 rows -> masked tail).
    _run_case(k1, B=2, S=9, D=128, cast_bf16=True, atol=3e-2, rtol=3e-2)

    # bf16 fast path with forced W striping (tn=128, two N steps) to exercise
    # the cached-LayerNorm reuse at j > 0.
    _run_case(k2, B=2, S=8, D=256, cast_bf16=True, atol=3e-2, rtol=3e-2,
              tile_n=128, resident_w_bytes=0)

    print("KERNEL_OK")
</pallas_src>

<mosaic_0001>
module attributes {stable_mosaic.version = 11 : i64} {
  func.func @prenorm_linear_kernel(%arg0: i32, %arg1: i32, %arg2: memref<16x32xf32, #tpu.memory_space<vmem>>, %arg3: memref<2x32xf32, #tpu.memory_space<vmem>>, %arg4: memref<32x32xf32, #tpu.memory_space<vmem>>, %arg5: memref<1x32xf32, #tpu.memory_space<vmem>>, %arg6: memref<16x32xf32, #tpu.memory_space<vmem>>, %arg7: memref<16x32xf32, #tpu.memory_space<vmem>>) attributes {dimension_semantics = [#tpu.dimension_semantics<parallel>, #tpu.dimension_semantics<arbitrary>], iteration_bounds = array<i64: 1, 1>, scalar_prefetch = 0 : i64, scratch_operands = 1 : i64, tpu.core_type = #tpu.core_type<tc>, window_params = [{transform_indices = @transform_0, window_bounds = array<i64: 16, 32>}, {pipeline_mode = #tpu.pipeline_mode<synchronous>, transform_indices = @transform_1, window_bounds = array<i64: 2, 32>}, {transform_indices = @transform_2, window_bounds = array<i64: 32, 32>}, {transform_indices = @transform_3, window_bounds = array<i64: 1, 32>}, {transform_indices = @transform_4, window_bounds = array<i64: 16, 32>}]} {
    %c0_i32 = arith.constant 0 : i32
    %0 = arith.cmpi eq, %arg1, %c0_i32 : i32
    %1 = arith.extui %0 : i1 to i32
    %c0_i32_0 = arith.constant 0 : i32
    %2 = arith.cmpi ne, %1, %c0_i32_0 : i32
    scf.if %2 {
      %c0_8 = arith.constant 0 : index
      %c0_9 = arith.constant 0 : index
      %10 = vector.load %arg2[%c0_8, %c0_9] : memref<16x32xf32, #tpu.memory_space<vmem>>, vector<16x32xf32>
      %cst_10 = arith.constant dense<0.000000e+00> : vector<16xf32>
      %11 = vector.multi_reduction <add>, %10, %cst_10 [1] : vector<16x32xf32> to vector<16xf32>
      %12 = vector.shape_cast %11 : vector<16xf32> to vector<16x1xf32>
      %cst_11 = arith.constant 3.200000e+01 : f32
      %13 = vector.broadcast %cst_11 : f32 to vector<16x1xf32>
      %14 = arith.divf %12, %13 : vector<16x1xf32>
      %15 = vector.broadcast %14 : vector<16x1xf32> to vector<16x32xf32>
      %16 = arith.subf %10, %15 : vector<16x32xf32>
      %17 = arith.mulf %16, %16 : vector<16x32xf32>
      %cst_12 = arith.constant dense<0.000000e+00> : vector<16xf32>
      %18 = vector.multi_reduction <add>, %17, %cst_12 [1] : vector<16x32xf32> to vector<16xf32>
      %19 = vector.shape_cast %18 : vector<16xf32> to vector<16x1xf32>
      %cst_13 = arith.constant 3.200000e+01 : f32
      %20 = vector.broadcast %cst_13 : f32 to vector<16x1xf32>
      %21 = arith.divf %19, %20 : vector<16x1xf32>
      %cst_14 = arith.constant 9.99999974E-6 : f32
      %22 = vector.broadcast %cst_14 : f32 to vector<16x1xf32>
      %23 = arith.addf %21, %22 : vector<16x1xf32>
      %24 = math.rsqrt %23 : vector<16x1xf32>
      %c0_15 = arith.constant 0 : index
      %c0_16 = arith.constant 0 : index
      %25 = vector.load %arg3[%c0_15, %c0_16] : memref<2x32xf32, #tpu.memory_space<vmem>>, vector<1x32xf32>
      %c1 = arith.constant 1 : index
      %c0_17 = arith.constant 0 : index
      %26 = vector.load %arg3[%c1, %c0_17] : memref<2x32xf32, #tpu.memory_space<vmem>>, vector<1x32xf32>
      %27 = vector.broadcast %24 : vector<16x1xf32> to vector<16x32xf32>
      %28 = arith.mulf %16, %27 : vector<16x32xf32>
      %29 = vector.broadcast %25 : vector<1x32xf32> to vector<16x32xf32>
      %30 = arith.mulf %28, %29 : vector<16x32xf32>
      %31 = vector.broadcast %26 : vector<1x32xf32> to vector<16x32xf32>
      %32 = arith.addf %30, %31 : vector<16x32xf32>
      %c0_18 = arith.constant 0 : index
      %c0_19 = arith.constant 0 : index
      %33 = vector.load %arg7[%c0_18, %c0_19] : memref<16x32xf32, #tpu.memory_space<vmem>>, vector<16x32xf32>
      tpu.vector_store %arg7[%c0_18, %c0_19], %32 {strides = array<i32>} : memref<16x32xf32, #tpu.memory_space<vmem>>, vector<16x32xf32>,
    } else {
    }
    %c0 = arith.constant 0 : index
    %c0_1 = arith.constant 0 : index
    %3 = vector.load %arg7[%c0, %c0_1] : memref<16x32xf32, #tpu.memory_space<vmem>>, vector<16x32xf32>
    %c0_2 = arith.constant 0 : index
    %c0_3 = arith.constant 0 : index
    %4 = vector.load %arg4[%c0_2, %c0_3] : memref<32x32xf32, #tpu.memory_space<vmem>>, vector<32x32xf32>
    %cst = arith.constant dense<0.000000e+00> : vector<16x32xf32>
    %5 = tpu.matmul %3, %4, %cst {dimension_numbers = #tpu.dot_dimension_numbers<[1], [0], [0], [1], [0, 0, 1, 1], [], []>} : vector<16x32xf32>, vector<32x32xf32>, vector<16x32xf32> -> vector<16x32xf32>
    %c0_4 = arith.constant 0 : index
    %c0_5 = arith.constant 0 : index
    %6 = vector.load %arg5[%c0_4, %c0_5] : memref<1x32xf32, #tpu.memory_space<vmem>>, vector<1x32xf32>
    %7 = vector.broadcast %6 : vector<1x32xf32> to vector<16x32xf32>
    %8 = arith.addf %5, %7 : vector<16x32xf32>
    %c0_6 = arith.constant 0 : index
    %c0_7 = arith.constant 0 : index
    %9 = vector.load %arg6[%c0_6, %c0_7] : memref<16x32xf32, #tpu.memory_space<vmem>>, vector<16x32xf32>
    tpu.vector_store %arg6[%c0_6, %c0_7], %8 {strides = array<i32>} : memref<16x32xf32, #tpu.memory_space<vmem>>, vector<16x32xf32>,
    return
  }
  func.func @transform_0(%arg0: i32, %arg1: i32) -> (i32, i32) {
    %c0_i32 = arith.constant 0 : i32
    %c0_i32_0 = arith.constant 0 : i32
    return %arg0, %c0_i32 : i32, i32
  }
  func.func @transform_1(%arg0: i32, %arg1: i32) -> (i32, i32) {
    %c0_i32 = arith.constant 0 : i32
    %c0_i32_0 = arith.constant 0 : i32
    %c0_i32_1 = arith.constant 0 : i32
    return %c0_i32, %c0_i32_0 : i32, i32
  }
  func.func @transform_2(%arg0: i32, %arg1: i32) -> (i32, i32) {
    %c0_i32 = arith.constant 0 : i32
    %c0_i32_0 = arith.constant 0 : i32
    return %c0_i32, %arg1 : i32, i32
  }
  func.func @transform_3(%arg0: i32, %arg1: i32) -> (i32, i32) {
    %c0_i32 = arith.constant 0 : i32
    %c0_i32_0 = arith.constant 0 : i32
    return %c0_i32, %arg1 : i32, i32
  }
  func.func @transform_4(%arg0: i32, %arg1: i32) -> (i32, i32) {
    %c0_i32 = arith.constant 0 : i32
    return %arg0, %arg1 : i32, i32
  }
}

</mosaic_0001>

<bundles_post_ra>
// kernel: prenorm_linear.1
= control target key start
LH: loop header
LB: loop body
LE: loop exit
PB: predicated region body
PF: predicated region fallthrough
CT: control target
= control target key end

     0   :  { %9 = vsyncpa [#allocation4], 0  ;;  %s375_s0 = inlined_call_operand.hbm [shape: f32[16,32], index: 0, kind: input, shape index: {}]   ;;  %s376_s1 = inlined_call_operand.vmem [shape: f32[2,32], index: 1, kind: input, shape index: {}]   ;;  %s377_s2 = inlined_call_operand.hbm [shape: f32[32,32], index: 2, kind: input, shape index: {}]   ;;  %s378_s3 = inlined_call_operand.vmem [shape: f32[1,32], index: 3, kind: input, shape index: {}]   ;;  %s379_s4 = inlined_call_operand.hbm [shape: f32[16,32], index: 4, kind: output, shape index: {}]  }
   0x1   :  { %10 = vsyncpa [#allocation7], 0 }
   0x2   :  { %11 = vsyncpa [#allocation5], 0  ;;  %s308_s15 = smov [#allocation3]  }
   0x3   :  { %s17_s16 = sshll.u32 %s308_s15, 4  ;;  %s18_s16 = int_to_ptr.vmem [resolvable:$true] %s17_s16 }
   0x4   :  { %s250_s17 = scalar_lea.vmem %s18_s16, 256  ;;  %p255_p1 = scmp.lt.s32.totalorder %s18_s16, %s18_s16 }
   0x5   :  { %p251_p0 = scmp.ne.s32.totalorder %s18_s16, %s250_s17  ;;  %p256_p2 = scmp.lt.s32.totalorder %s250_s17, %s250_s17 }
   0x7   :  { %p257_p3 = por %p256_p2, %p255_p1 }
   0x9   :  { %p258_p4 = pnand %p257_p3, %p251_p0 }
   0xb   :  { %261 = shalt.err (!%p258_p4)
}
   0xc   :  { %s309_s18 = smov 128   ;;  %s310_s19 = smov 8  }
   0xd   :  { %23 = dma.hbm_to_vmem [thread:$0]  %s375_s0, 256, %s18_s16, [#allocation4], %s309_s18, %s309_s18, %s310_s19  }
   0xe   :  { %s311_s22 = smov [#allocation6]  }
   0xf   :  { %s31_s23 = sshll.u32 %s311_s22, 4  ;;  %s32_s23 = int_to_ptr.vmem [resolvable:$true] %s31_s23 }
  0x10   :  { %s270_s24 = scalar_lea.vmem %s32_s23, 512  ;;  %p275_p6 = scmp.lt.s32.totalorder %s32_s23, %s32_s23 }
  0x11   :  { %p271_p5 = scmp.ne.s32.totalorder %s32_s23, %s270_s24  ;;  %p276_p7 = scmp.lt.s32.totalorder %s270_s24, %s270_s24 }
  0x13   :  { %p277_p8 = por %p276_p7, %p275_p6 }
  0x15   :  { %p278_p9 = pnand %p277_p8, %p271_p5 }
  0x17   :  { %281 = shalt.err (!%p278_p9)
}
  0x18   :  { %37 = dma.hbm_to_vmem [thread:$0]  %s377_s2, 512, %s32_s23, [#allocation7], %s309_s18, %s309_s18, %s310_s19  }
  0x19   :  { %302 = dma.done.wait [#allocation4], 256  }
  0x1a   :  { %303 = vsyncadd [#allocation4], 4294967040 }
  0x1b   :  { %304 = dma.done.wait [#allocation7], 512  }
  0x1c   :  { %305 = vsyncadd [#allocation7], 4294966784  ;;  %vm52_vm0 = vcmask 261120   ;;  %v50_v0 = vld [vmem:[#allocation3] sm:$0xff]  ;;  %v51_v1 = vld [vmem:[#allocation3 + $0x8] sm:$0xff] }
  0x1d   :  { %v53_v2 = vsel %vm52_vm0, %v50_v0, 0.0  ;;  %v56_v3 = vsel %vm52_vm0, %v51_v1, 0.0  ;;  %v101_v14 = vld [vmem:[#allocation6 + $0x18] sm:$0xff]  ;;  %v100_v15 = vld [vmem:[#allocation6 + $0x10] sm:$0xff]  ;;  %v99_v16 = vld [vmem:[#allocation6 + $0x8] sm:$0xff] }
  0x1e   :  { %54 = vadd.xlane.f32.xlu0 %v53_v2  ;;  %222 = vmatprep.subr.mxu0 %v101_v14  ;;  %v98_v17 = vld [vmem:[#allocation6] sm:$0xff] }
  0x1f   :  { %223 = vmatpush3.msra.mxu0 %v101_v14  ;;  %v211_v25 = vld [vmem:[%s376_s1] ss:$0 sm:$0xff]  ;;  %v212_v27 = vld [vmem:[%s376_s1 + $0x1] ss:$0 sm:$0xff]  ;;  %s312_s1 = smov [#allocation8]  }
  0x20   :  { %224 = vmatprep.subr.mxu0 %v100_v15  ;;  %v213_v36 = vld [vmem:[%s378_s3] ss:$0 sm:$0xff]  ;;  %s198_s5 = sshll.u32 %s312_s1, 4  ;;  %s199_s5 = int_to_ptr.vmem [resolvable:$true] %s198_s5 }
  0x21   :  { %225 = vmatpush3.msra.mxu0 %v100_v15  ;;  %s282_s6 = scalar_lea.vmem %s199_s5, 256  ;;  %p287_p11 = scmp.lt.s32.totalorder %s199_s5, %s199_s5 }
  0x22   :  { %57 = vadd.xlane.f32.xlu0 %v56_v3  ;;  %226 = vmatprep.subr.mxu0 %v99_v16  ;;  %p283_p10 = scmp.ne.s32.totalorder %s199_s5, %s282_s6  ;;  %p288_p12 = scmp.lt.s32.totalorder %s282_s6, %s282_s6 }
  0x23   :  { %227 = vmatpush3.msra.mxu0 %v99_v16 }
  0x24   :  { %228 = vmatprep.subr.mxu0 %v98_v17  ;;  %p289_p13 = por %p288_p12, %p287_p11 }
  0x25   :  { %229 = vmatpush3.msra.mxu0 %v98_v17 }
  0x26   :  { %p290_p0 = pnand %p289_p13, %p283_p10 }
  0xa7   :  { %v55_v4 = vpop.xlane.xlu0 %54 }
  0xa8   :  { %v60_v5 = vmul.f32 0.03125, %v55_v4 }
  0xaa   :  { %v62_v6 = vsub.f32 %v50_v0, %v60_v5 }
  0xab   :  { %v58_v7 = vpop.xlane.xlu0 %57 }
  0xac   :  { %v61_v8 = vmul.f32 0.03125, %v58_v7  ;;  %v64_v9 = vmul.f32 %v62_v6, %v62_v6 }
  0xae   :  { %v63_v10 = vsub.f32 %v51_v1, %v61_v8  ;;  %v66_v11 = vsel %vm52_vm0, %v64_v9, 0.0 }
  0xaf   :  { %67 = vadd.xlane.f32.xlu1 %v66_v11 }
  0xb0   :  { %v65_v12 = vmul.f32 %v63_v10, %v63_v10 }
  0xb2   :  { %v69_v13 = vsel %vm52_vm0, %v65_v12, 0.0 }
  0xb3   :  { %70 = vadd.xlane.f32.xlu1 %v69_v13 }
 0x138   :  { %v68_v18 = vpop.xlane.xlu1 %67 }
 0x139   :  { %v72_v19 = vmul.f32 0.03125, %v68_v18 }
 0x13b   :  { %v74_v20 = vadd.f32 1e-05, %v72_v19 }
 0x13c   :  { %v71_v21 = vpop.xlane.xlu1 %70 }
 0x13d   :  { %238 = vrsqrt.f32 %v74_v20  ;;  %v73_v22 = vmul.f32 0.03125, %v71_v21 }
 0x13f   :  { %v75_v23 = vadd.f32 1e-05, %v73_v22 }
 0x141   :  { %240 = vrsqrt.f32 %v75_v23 }
 0x14a   :  { %v239_v24 = vpop.eup %238 }
 0x14b   :  { %v80_v26 = vmul.f32 %v239_v24, %v62_v6 }
 0x14d   :  { %v86_v28 = vmul.f32 %v211_v25, %v80_v26 }
 0x14e   :  { %v241_v29 = vpop.eup %240 }
 0x14f   :  { %v92_v30 = vadd.f32 %v212_v27, %v86_v28  ;;  %v81_v31 = vmul.f32 %v241_v29, %v63_v10 }
 0x151   :  { %94 = vst.msk [vmem:[#allocation2] sm:$0xff] %vm52_vm0, %v92_v30  ;;  %v87_v32 = vmul.f32 %v211_v25, %v81_v31 }
 0x153   :  { %v93_v33 = vadd.f32 %v212_v27, %v87_v32 }
 0x155   :  { %95 = vst.msk [vmem:[#allocation2 + $0x8] sm:$0xff] %vm52_vm0, %v93_v33 }
 0x158   :  { %v96_v34 = vld [vmem:[#allocation2] sm:$0xff] }
 0x159   :  { %230 = vmatprep.mubr.msk.f32.mxu0 %vm52_vm0, %v96_v34 }
 0x15c   :  { %v97_v35 = vld [vmem:[#allocation2 + $0x8] sm:$0xff] }
 0x15d   :  { %231 = vmatmul.mubr.msk.f32.vlgmr.msra.gmra.mxu0 %vm52_vm0, %v97_v35 }
 0x21d   :  { %v232_v37 = vpop.f32.mrf.mxu0 }
 0x21e   :  { %v188_v38 = vadd.f32 %v232_v37, %v213_v36 }
 0x21f   :  { %v182_v39 = vpop.f32.mrf.mxu0 }
 0x220   :  { %192 = vst.msk [vmem:[#allocation8 + $0x8] sm:$0xff] %vm52_vm0, %v188_v38  ;;  %v183_v40 = vadd.f32 %v213_v36, %v182_v39 }
 0x222   :  { %191 = vst.msk [vmem:[#allocation8] sm:$0xff] %vm52_vm0, %v183_v40 }
 0x223   :  { %293 = shalt.err (!%p290_p0)
}
 0x224   :  { %204 = dma.vmem_to_hbm [thread:$0]  %s199_s5, 256, %s379_s4, [#allocation5], %s309_s18, %s309_s18, %s310_s19  }
 0x225   :  { %306 = dma.done.wait [#allocation5], 256  }
 0x226   :  { %307 = vsyncadd [#allocation5], 4294967040 }
 0x227   :  { %208 = vsyncpa [#allocation4], 1 }
 0x228   :  { %209 = vsyncpa [#allocation7], 1 }
 0x229   :  { %210 = vsyncpa [#allocation5], 1 }

</bundles_post_ra>
